<compile_context>
chip_gen: v7x
topology: tpu7x:2x2x1
jax: 0.10.0
libtpu: 0.0.40
codegen_flags: <defaults>
</compile_context>

<pallas_src>
import functools

import jax
import jax.numpy as jnp
from jax.experimental import pallas as pl
from jax.experimental.pallas import tpu as pltpu

LANES = 128
# Second-minor (sublane) granularity by itemsize: f32 -> 8, bf16 -> 16, 8-bit -> 32.
_SUBLANE = {8: 8, 4: 8, 2: 16, 1: 32}


def _tpu_cores_and_kind():
    try:
        kind = jax.devices()[0].device_kind.lower()
    except Exception:  # defensive: never fail the wrapper on an odd backend
        kind = ""
    two_tc = any(g in kind for g in ("v7", "v5p", "v4"))
    return (2 if two_tc else 1), kind


def _dice_kernel(o_ref, t_ref, out_ref, acc_ref, *,
                 steps_per_shard, rows_tile, valid_rows, needs_mask):
    k = pl.program_id(1)

    @pl.when(k == 0)
    def _():
        acc_ref[...] = jnp.zeros_like(acc_ref)

    o = o_ref[...].astype(jnp.float32)   # (B, rows_tile, 128)
    t = t_ref[...].astype(jnp.float32)

    def accumulate(ov, tv):
        # Lane-wise partial sums only (VPU work); the tiny cross-lane
        # reduction happens once in the wrapper epilogue.
        acc_ref[0] += jnp.sum(ov * tv, axis=1)
        acc_ref[1] += jnp.sum(ov * ov, axis=1)
        acc_ref[2] += jnp.sum(tv * tv, axis=1)

    if needs_mask:
        s = pl.program_id(0)
        row0 = (s * steps_per_shard + k) * rows_tile
        is_partial = row0 + rows_tile > valid_rows

        # Clean steps skip the iota/compare/where entirely.
        @pl.when(jnp.logical_not(is_partial))
        def _():
            accumulate(o, t)

        # Only the genuinely partial (or clamped duplicate) steps pay the mask.
        @pl.when(is_partial)
        def _():
            rows = row0 + jax.lax.broadcasted_iota(jnp.int32, o.shape, 1)
            valid = rows < valid_rows
            accumulate(jnp.where(valid, o, 0.0), jnp.where(valid, t, 0.0))
    else:
        accumulate(o, t)

    @pl.when(k == steps_per_shard - 1)
    def _():
        out_ref[...] = acc_ref[...]   # single lane-dense store per shard


def _partial_sums_jnp(o, t):
    of = o.astype(jnp.float32)
    tf = t.astype(jnp.float32)
    return (jnp.sum(of * tf, axis=1),
            jnp.sum(of * of, axis=1),
            jnp.sum(tf * tf, axis=1))


def _loss_from_sums(inter, osq, tsq):
    dice = 2.0 * inter / jnp.maximum(osq + tsq, 1e-6)
    return 1.0 - jnp.mean(dice)


@functools.partial(
    jax.jit,
    static_argnames=("block_bytes", "max_shards", "buffer_depth",
                     "vmem_limit_bytes", "min_kernel_elems"))
def dice_loss(output, target, *, block_bytes=4 * 1024 * 1024, max_shards=None,
              buffer_depth=None, vmem_limit_bytes=None,
              min_kernel_elems=256 * 1024):
    assert output.shape == target.shape
    b = output.shape[0]
    o = output.reshape(b, -1)   # free reshape, native dtype (no eager astype)
    t = target.reshape(b, -1)
    n = o.shape[1]

    cores, kind = _tpu_cores_and_kind()
    if max_shards is None:
        max_shards = cores                       # 1 on v5e/v6e, 2 on v7x/v5p
    if buffer_depth is None:
        buffer_depth = 3 if "v7" in kind else 2  # hide DMA issue latency on v7x
    if vmem_limit_bytes is None:
        # Explicit scoped-VMEM limit; v7x has only 64 MiB physical VMEM.
        vmem_limit_bytes = (32 << 20) if "v7" in kind else (64 << 20)

    # Tiny inputs: kernel launch / grid / DMA setup overhead dominates.
    if n < max(min_kernel_elems, LANES):
        return _loss_from_sums(*_partial_sums_jnp(o, t))

    # Aligned prefix -> lane-dense (B, R, 128) view for the kernel; the rare
    # <128-column ragged tail is summed with plain jnp (no full-array pad).
    n_al = (n // LANES) * LANES
    rem = n - n_al
    r = n_al // LANES
    if rem:
        # TODO(synk): a manual-DMA path could stream the ragged case without
        # the aligned-prefix slice copy XLA materializes here.
        o_al, t_al = o[:, :n_al], t[:, :n_al]
    else:
        o_al, t_al = o, t
    o3 = o_al.reshape(b, r, LANES)
    t3 = t_al.reshape(b, r, LANES)

    # ---- dtype- and VMEM-aware tiling --------------------------------------
    it_o = output.dtype.itemsize
    it_t = target.dtype.itemsize
    granule = max(_SUBLANE.get(it_o, 8), _SUBLANE.get(it_t, 8))

    rt_from_bytes = max(granule, block_bytes // (b * LANES * max(it_o, it_t)))
    rt_from_vmem = max(
        granule,
        int(vmem_limit_bytes * 0.6)
        // (buffer_depth * b * LANES * (it_o + it_t)))
    rt_cap = max(granule, min(rt_from_bytes, rt_from_vmem))

    n_shards = max(1, min(max_shards, r))
    if n_shards == 1 and r <= rt_cap:
        rt = r                                   # single full-extent block
    elif r <= granule:
        rt, n_shards = r, 1
    else:
        hi = max(granule, (min(rt_cap, r) // granule) * granule)
        lo = min(hi, max(granule, (rt_cap // 4 // granule) * granule))
        rt = None
        # Prefer an exact factorization (no in-kernel masking, even shard
        # split) as long as the tile stays within ~4x of the byte target.
        for cand in range(hi, lo - 1, -granule):
            if r % cand == 0 and (-(-r // cand)) % n_shards == 0:
                rt = cand
                break
        if rt is None:
            rt = hi                              # big tile; mask ragged tail
    r_blocks = -(-r // rt)
    n_shards = max(1, min(n_shards, r_blocks))
    steps = -(-r_blocks // n_shards)
    # Single source of truth: any step can see garbage / duplicated rows only
    # when the last block is partial or the shard split leaves empty steps.
    exact = (r % rt == 0) and (r_blocks % n_shards == 0)

    kernel = functools.partial(
        _dice_kernel,
        steps_per_shard=steps,
        rows_tile=rt,
        valid_rows=r,
        needs_mask=not exact,
    )

    if exact:
        def in_map(s, k):
            return (0, s * steps + k, 0)
    else:
        last_blk = r_blocks - 1

        def in_map(s, k):
            # Clamp so the (possibly empty) trailing steps of the last shard
            # stay in bounds; their contribution is zeroed by the row mask.
            return (0, jnp.minimum(s * steps + k, last_blk), 0)

    spec_kwargs = {} if buffer_depth == 2 else dict(
        pipeline_mode=pl.Buffered(buffer_depth))
    in_spec = pl.BlockSpec((b, rt, LANES), in_map, **spec_kwargs)

    partials = pl.pallas_call(
        kernel,
        out_shape=jax.ShapeDtypeStruct((3, b, n_shards * LANES), jnp.float32),
        grid_spec=pltpu.PrefetchScalarGridSpec(
            num_scalar_prefetch=0,
            grid=(n_shards, steps),
            in_specs=[in_spec, in_spec],
            out_specs=pl.BlockSpec((3, b, LANES), lambda s, k: (0, 0, s)),
            scratch_shapes=[pltpu.VMEM((3, b, LANES), jnp.float32)],
        ),
        compiler_params=pltpu.CompilerParams(
            dimension_semantics=("parallel", "arbitrary"),
            vmem_limit_bytes=vmem_limit_bytes,
        ),
    )(o3, t3)

    sums = jnp.sum(partials, axis=-1)            # (3, B): lanes + shards
    inter, osq, tsq = sums[0], sums[1], sums[2]
    if rem:
        ti, to_, tt = _partial_sums_jnp(o[:, n_al:], t[:, n_al:])
        inter, osq, tsq = inter + ti, osq + to_, tsq + tt
    return _loss_from_sums(inter, osq, tsq)


def _dice_loss_ref(output, target):
    b = output.shape[0]
    o = output.reshape(b, -1).astype(jnp.float32)
    t = target.reshape(b, -1).astype(jnp.float32)
    inter = jnp.sum(o * t, axis=1)
    union = jnp.sum(o * o, axis=1) + jnp.sum(t * t, axis=1)
    return 1.0 - jnp.mean(2.0 * inter / jnp.maximum(union, 1e-6))


if __name__ == "__main__":
    key = jax.random.PRNGKey(0)
    k1, k2, k3, k4, k5, k6 = jax.random.split(key, 6)

    # Case 1: small segmentation-style input, forced through the Pallas kernel.
    out1 = jax.nn.sigmoid(jax.random.normal(k1, (2, 4, 16, 16), jnp.float32))
    tgt1 = (jax.random.uniform(k2, (2, 4, 16, 16)) > 0.5).astype(jnp.float32)
    l1 = dice_loss(out1, tgt1, min_kernel_elems=0)
    jax.block_until_ready(l1)
    r1 = _dice_loss_ref(out1, tgt1)
    assert jnp.allclose(l1, r1, atol=1e-5, rtol=1e-5), (l1, r1)

    # Case 2: ragged n (not a multiple of 128): gated partial-block mask in the
    # kernel plus the tiny jnp tail path (no full-array pad).
    out2 = jax.nn.sigmoid(jax.random.normal(k3, (2, 3, 40, 40), jnp.float32))
    tgt2 = (jax.random.uniform(k4, (2, 3, 40, 40)) > 0.5).astype(jnp.float32)
    l2 = dice_loss(out2, tgt2, min_kernel_elems=0, block_bytes=8 * 1024)
    jax.block_until_ready(l2)
    r2 = _dice_loss_ref(out2, tgt2)
    assert jnp.allclose(l2, r2, atol=1e-5, rtol=1e-5), (l2, r2)

    # Case 3: aligned bf16 input, multi-step reduction + exact 2-way shard split.
    out3 = jax.nn.sigmoid(jax.random.normal(k5, (2, 8, 64, 128), jnp.bfloat16))
    tgt3 = (jax.random.uniform(k6, (2, 8, 64, 128)) > 0.5).astype(jnp.bfloat16)
    l3 = dice_loss(out3, tgt3, min_kernel_elems=0, block_bytes=128 * 1024,
                   max_shards=2)
    jax.block_until_ready(l3)
    r3 = _dice_loss_ref(out3, tgt3)
    assert jnp.allclose(l3, r3, atol=2e-3, rtol=2e-3), (l3, r3)

    # Case 4: tiny input takes the pure-jnp fallback path (default threshold).
    l4 = dice_loss(out1, tgt1)
    jax.block_until_ready(l4)
    assert jnp.allclose(l4, r1, atol=1e-5, rtol=1e-5), (l4, r1)

    print("KERNEL_OK")
</pallas_src>

<mosaic_0001>
module attributes {stable_mosaic.version = 11 : i64} {
  func.func @_dice_kernel(%arg0: i32, %arg1: i32, %arg2: memref<2x8x128xf32, #tpu.memory_space<vmem>>, %arg3: memref<2x8x128xf32, #tpu.memory_space<vmem>>, %arg4: memref<3x2x128xf32, #tpu.memory_space<vmem>>, %arg5: memref<3x2x128xf32, #tpu.memory_space<vmem>>) attributes {dimension_semantics = [#tpu.dimension_semantics<parallel>, #tpu.dimension_semantics<arbitrary>], iteration_bounds = array<i64: 1, 1>, scalar_prefetch = 0 : i64, scratch_operands = 1 : i64, tpu.core_type = #tpu.core_type<tc>, window_params = [{transform_indices = @transform_0, window_bounds = array<i64: 2, 8, 128>}, {transform_indices = @transform_1, window_bounds = array<i64: 2, 8, 128>}, {transform_indices = @transform_2, window_bounds = array<i64: 3, 2, 128>}]} {
    %c0_i32 = arith.constant 0 : i32
    %0 = arith.cmpi eq, %arg1, %c0_i32 : i32
    %1 = arith.extui %0 : i1 to i32
    %c0_i32_0 = arith.constant 0 : i32
    %2 = arith.cmpi ne, %1, %c0_i32_0 : i32
    scf.if %2 {
      %cst_26 = arith.constant 0.000000e+00 : f32
      %32 = vector.broadcast %cst_26 : f32 to vector<3x2x128xf32>
      %c0_27 = arith.constant 0 : index
      %c0_28 = arith.constant 0 : index
      %c0_29 = arith.constant 0 : index
      %33 = vector.load %arg5[%c0_27, %c0_28, %c0_29] : memref<3x2x128xf32, #tpu.memory_space<vmem>>, vector<3x2x128xf32>
      tpu.vector_store %arg5[%c0_27, %c0_28, %c0_29], %32 {strides = array<i32>} : memref<3x2x128xf32, #tpu.memory_space<vmem>>, vector<3x2x128xf32>,
    } else {
    }
    %c0 = arith.constant 0 : index
    %c0_1 = arith.constant 0 : index
    %c0_2 = arith.constant 0 : index
    %3 = vector.load %arg2[%c0, %c0_1, %c0_2] : memref<2x8x128xf32, #tpu.memory_space<vmem>>, vector<2x8x128xf32>
    %c0_3 = arith.constant 0 : index
    %c0_4 = arith.constant 0 : index
    %c0_5 = arith.constant 0 : index
    %4 = vector.load %arg3[%c0_3, %c0_4, %c0_5] : memref<2x8x128xf32, #tpu.memory_space<vmem>>, vector<2x8x128xf32>
    %c0_6 = arith.constant 0 : index
    %c0_7 = arith.constant 0 : index
    %c0_8 = arith.constant 0 : index
    %5 = vector.load %arg5[%c0_6, %c0_7, %c0_8] : memref<3x2x128xf32, #tpu.memory_space<vmem>>, vector<1x2x128xf32>
    %6 = vector.shape_cast %5 : vector<1x2x128xf32> to vector<2x128xf32>
    %7 = arith.mulf %3, %4 : vector<2x8x128xf32>
    %cst = arith.constant dense<0.000000e+00> : vector<2x128xf32>
    %8 = vector.multi_reduction <add>, %7, %cst [1] : vector<2x8x128xf32> to vector<2x128xf32>
    %9 = arith.addf %6, %8 : vector<2x128xf32>
    %c0_9 = arith.constant 0 : index
    %c0_10 = arith.constant 0 : index
    %c0_11 = arith.constant 0 : index
    %10 = vector.load %arg5[%c0_9, %c0_10, %c0_11] : memref<3x2x128xf32, #tpu.memory_space<vmem>>, vector<1x2x128xf32>
    %11 = vector.shape_cast %10 : vector<1x2x128xf32> to vector<2x128xf32>
    %12 = vector.shape_cast %9 : vector<2x128xf32> to vector<1x2x128xf32>
    tpu.vector_store %arg5[%c0_9, %c0_10, %c0_11], %12 {strides = array<i32>} : memref<3x2x128xf32, #tpu.memory_space<vmem>>, vector<1x2x128xf32>,
    %c1 = arith.constant 1 : index
    %c0_12 = arith.constant 0 : index
    %c0_13 = arith.constant 0 : index
    %13 = vector.load %arg5[%c1, %c0_12, %c0_13] : memref<3x2x128xf32, #tpu.memory_space<vmem>>, vector<1x2x128xf32>
    %14 = vector.shape_cast %13 : vector<1x2x128xf32> to vector<2x128xf32>
    %15 = arith.mulf %3, %3 : vector<2x8x128xf32>
    %cst_14 = arith.constant dense<0.000000e+00> : vector<2x128xf32>
    %16 = vector.multi_reduction <add>, %15, %cst_14 [1] : vector<2x8x128xf32> to vector<2x128xf32>
    %17 = arith.addf %14, %16 : vector<2x128xf32>
    %c1_15 = arith.constant 1 : index
    %c0_16 = arith.constant 0 : index
    %c0_17 = arith.constant 0 : index
    %18 = vector.load %arg5[%c1_15, %c0_16, %c0_17] : memref<3x2x128xf32, #tpu.memory_space<vmem>>, vector<1x2x128xf32>
    %19 = vector.shape_cast %18 : vector<1x2x128xf32> to vector<2x128xf32>
    %20 = vector.shape_cast %17 : vector<2x128xf32> to vector<1x2x128xf32>
    tpu.vector_store %arg5[%c1_15, %c0_16, %c0_17], %20 {strides = array<i32>} : memref<3x2x128xf32, #tpu.memory_space<vmem>>, vector<1x2x128xf32>,
    %c2 = arith.constant 2 : index
    %c0_18 = arith.constant 0 : index
    %c0_19 = arith.constant 0 : index
    %21 = vector.load %arg5[%c2, %c0_18, %c0_19] : memref<3x2x128xf32, #tpu.memory_space<vmem>>, vector<1x2x128xf32>
    %22 = vector.shape_cast %21 : vector<1x2x128xf32> to vector<2x128xf32>
    %23 = arith.mulf %4, %4 : vector<2x8x128xf32>
    %cst_20 = arith.constant dense<0.000000e+00> : vector<2x128xf32>
    %24 = vector.multi_reduction <add>, %23, %cst_20 [1] : vector<2x8x128xf32> to vector<2x128xf32>
    %25 = arith.addf %22, %24 : vector<2x128xf32>
    %c2_21 = arith.constant 2 : index
    %c0_22 = arith.constant 0 : index
    %c0_23 = arith.constant 0 : index
    %26 = vector.load %arg5[%c2_21, %c0_22, %c0_23] : memref<3x2x128xf32, #tpu.memory_space<vmem>>, vector<1x2x128xf32>
    %27 = vector.shape_cast %26 : vector<1x2x128xf32> to vector<2x128xf32>
    %28 = vector.shape_cast %25 : vector<2x128xf32> to vector<1x2x128xf32>
    tpu.vector_store %arg5[%c2_21, %c0_22, %c0_23], %28 {strides = array<i32>} : memref<3x2x128xf32, #tpu.memory_space<vmem>>, vector<1x2x128xf32>,
    %c0_i32_24 = arith.constant 0 : i32
    %29 = arith.cmpi eq, %arg1, %c0_i32_24 : i32
    %30 = arith.extui %29 : i1 to i32
    %c0_i32_25 = arith.constant 0 : i32
    %31 = arith.cmpi ne, %30, %c0_i32_25 : i32
    scf.if %31 {
      %c0_26 = arith.constant 0 : index
      %c0_27 = arith.constant 0 : index
      %c0_28 = arith.constant 0 : index
      %32 = vector.load %arg5[%c0_26, %c0_27, %c0_28] : memref<3x2x128xf32, #tpu.memory_space<vmem>>, vector<3x2x128xf32>
      %c0_29 = arith.constant 0 : index
      %c0_30 = arith.constant 0 : index
      %c0_31 = arith.constant 0 : index
      %33 = vector.load %arg4[%c0_29, %c0_30, %c0_31] : memref<3x2x128xf32, #tpu.memory_space<vmem>>, vector<3x2x128xf32>
      tpu.vector_store %arg4[%c0_29, %c0_30, %c0_31], %32 {strides = array<i32>} : memref<3x2x128xf32, #tpu.memory_space<vmem>>, vector<3x2x128xf32>,
    } else {
    }
    return
  }
  func.func @transform_0(%arg0: i32, %arg1: i32) -> (i32, i32, i32) {
    %c1_i32 = arith.constant 1 : i32
    %0 = arith.muli %arg0, %c1_i32 : i32
    %1 = arith.addi %0, %arg1 : i32
    %c0_i32 = arith.constant 0 : i32
    %c0_i32_0 = arith.constant 0 : i32
    %c0_i32_1 = arith.constant 0 : i32
    return %c0_i32, %1, %c0_i32_0 : i32, i32, i32
  }
  func.func @transform_1(%arg0: i32, %arg1: i32) -> (i32, i32, i32) {
    %c1_i32 = arith.constant 1 : i32
    %0 = arith.muli %arg0, %c1_i32 : i32
    %1 = arith.addi %0, %arg1 : i32
    %c0_i32 = arith.constant 0 : i32
    %c0_i32_0 = arith.constant 0 : i32
    %c0_i32_1 = arith.constant 0 : i32
    return %c0_i32, %1, %c0_i32_0 : i32, i32, i32
  }
  func.func @transform_2(%arg0: i32, %arg1: i32) -> (i32, i32, i32) {
    %c0_i32 = arith.constant 0 : i32
    %c0_i32_0 = arith.constant 0 : i32
    %c0_i32_1 = arith.constant 0 : i32
    return %c0_i32, %c0_i32_0, %arg0 : i32, i32, i32
  }
}

</mosaic_0001>

<bundles_post_ra>
// kernel: dice_loss.1
= control target key start
LH: loop header
LB: loop body
LE: loop exit
PB: predicated region body
PF: predicated region fallthrough
CT: control target
= control target key end

     0   :  { %7 = vsyncpa [#allocation4], 0  ;;  %s291_s0 = inlined_call_operand.hbm [shape: f32[2,8,128], index: 0, kind: input, shape index: {}]   ;;  %s292_s1 = inlined_call_operand.hbm [shape: f32[2,8,128], index: 1, kind: input, shape index: {}]   ;;  %s293_s2 = inlined_call_operand.hbm [shape: f32[3,2,128], index: 2, kind: output, shape index: {}]  }
   0x1   :  { %8 = vsyncpa [#allocation7], 0 }
   0x2   :  { %9 = vsyncpa [#allocation5], 0  ;;  %s232_s9 = smov [#allocation3]   ;;  %s160_s13 = scalar_lea.hbm %s291_s0, 256 }
   0x3   :  { %s18_s10 = sshll.u32 %s232_s9, 4  ;;  %p161_p0 = scmp.ne.s32.totalorder %s291_s0, %s160_s13  ;;  %s19_s10 = int_to_ptr.vmem [resolvable:$true] %s18_s10 }
   0x4   :  { %p164_p1 = scmp.lt.u32.totalorder %s160_s13, %s291_s0 }
   0x6   :  { %p166_p2 = pnand %p164_p1, %p161_p0 }
   0x8   :  { %169 = shalt.err (!%p166_p2)
}
   0x9   :  { %s170_s18 = scalar_lea.vmem %s19_s10, 256  ;;  %p175_p4 = scmp.lt.s32.totalorder %s19_s10, %s19_s10 }
   0xa   :  { %p171_p3 = scmp.ne.s32.totalorder %s19_s10, %s170_s18  ;;  %p176_p5 = scmp.lt.s32.totalorder %s170_s18, %s170_s18 }
   0xc   :  { %p177_p6 = por %p176_p5, %p175_p4 }
   0xe   :  { %p178_p7 = pnand %p177_p6, %p171_p3 }
  0x10   :  { %181 = shalt.err (!%p178_p7)
}
  0x11   :  { %s233_s19 = smov 128   ;;  %s234_s20 = smov 8  }
  0x12   :  { %24 = dma.hbm_to_vmem [thread:$0]  %s291_s0, 256, %s19_s10, [#allocation4], %s233_s19, %s233_s19, %s234_s20  }
  0x13   :  { %s235_s23 = smov [#allocation6]   ;;  %s182_s27 = scalar_lea.hbm %s292_s1, 256 }
  0x14   :  { %s33_s24 = sshll.u32 %s235_s23, 4  ;;  %p183_p8 = scmp.ne.s32.totalorder %s292_s1, %s182_s27  ;;  %s34_s24 = int_to_ptr.vmem [resolvable:$true] %s33_s24 }
  0x15   :  { %p186_p9 = scmp.lt.u32.totalorder %s182_s27, %s292_s1 }
  0x17   :  { %p188_p10 = pnand %p186_p9, %p183_p8 }
  0x19   :  { %191 = shalt.err (!%p188_p10)
}
  0x1a   :  { %s192_s4 = scalar_lea.vmem %s34_s24, 256  ;;  %p197_p12 = scmp.lt.s32.totalorder %s34_s24, %s34_s24 }
  0x1b   :  { %p193_p11 = scmp.ne.s32.totalorder %s34_s24, %s192_s4  ;;  %p198_p13 = scmp.lt.s32.totalorder %s192_s4, %s192_s4 }
  0x1d   :  { %p199_p0 = por %p198_p13, %p197_p12 }
  0x1f   :  { %p200_p1 = pnand %p199_p0, %p193_p11 }
  0x21   :  { %203 = shalt.err (!%p200_p1)
}
  0x22   :  { %39 = dma.hbm_to_vmem [thread:$0]  %s292_s1, 256, %s34_s24, [#allocation7], %s233_s19, %s233_s19, %s234_s20  }
  0x23   :  { %226 = dma.done.wait [#allocation4], 256  }
  0x24   :  { %227 = vsyncadd [#allocation4], 4294967040 }
  0x25   :  { %228 = dma.done.wait [#allocation7], 256  }
  0x26   :  { %229 = vsyncadd [#allocation7], 4294967040  ;;  %v236_v0 = vmov 0.0   ;;  %v55_v1 = vld [vmem:[#allocation3] sm:$0xff]  ;;  %v56_v2 = vld [vmem:[#allocation3 + $0x8] sm:$0xff]  ;;  %vm76_vm0 = vcmask 1041409  }
  0x27   :  { %52 = vst [vmem:[#allocation2] sm:$0x3] %v236_v0  ;;  %53 = vst [vmem:[#allocation2 + $0x2] sm:$0x3] %v236_v0  ;;  %v57_v3 = vld [vmem:[#allocation6] sm:$0xff]  ;;  %v58_v4 = vld [vmem:[#allocation6 + $0x8] sm:$0xff]  ;;  %v83_v6 = vmul.f32 %v55_v1, %v55_v1  ;;  %v84_v7 = vmul.f32 %v56_v2, %v56_v2 }
  0x28   :  { %54 = vst [vmem:[#allocation2 + $0x4] sm:$0x3] %v236_v0  ;;  %v60_v5 = vmul.f32 %v57_v3, %v55_v1  ;;  %v105_v8 = vmul.f32 %v57_v3, %v57_v3  ;;  %v61_v9 = vmul.f32 %v58_v4, %v56_v2  ;;  %v106_v10 = vmul.f32 %v58_v4, %v58_v4  ;;  %s237_s1 = smov [#allocation8]  }
  0x29   :  { %v85_v12 = vrot.slane %v83_v6, 4  ;;  %v91_v13 = vrot.slane %v84_v7, 4  ;;  %s139_s6 = sshll.u32 %s237_s1, 4  ;;  %s140_s6 = int_to_ptr.vmem [resolvable:$true] %s139_s6 }
  0x2a   :  { %v62_v11 = vrot.slane %v60_v5, 4  ;;  %v107_v14 = vrot.slane %v105_v8, 4  ;;  %v68_v15 = vrot.slane %v61_v9, 4  ;;  %v113_v16 = vrot.slane %v106_v10, 4  ;;  %s204_s7 = scalar_lea.vmem %s140_s6, 96  ;;  %p209_p3 = scmp.lt.s32.totalorder %s140_s6, %s140_s6 }
  0x2b   :  { %v86_v18 = vadd.f32 %v85_v12, %v83_v6  ;;  %v92_v19 = vadd.f32 %v91_v13, %v84_v7  ;;  %p205_p2 = scmp.ne.s32.totalorder %s140_s6, %s204_s7  ;;  %p210_p4 = scmp.lt.s32.totalorder %s204_s7, %s204_s7 }
  0x2c   :  { %v63_v17 = vadd.f32 %v62_v11, %v60_v5  ;;  %v108_v20 = vadd.f32 %v107_v14, %v105_v8  ;;  %v69_v21 = vadd.f32 %v68_v15, %v61_v9  ;;  %v114_v22 = vadd.f32 %v113_v16, %v106_v10 }
  0x2d   :  { %v87_v24 = vrot.slane %v86_v18, 2  ;;  %v93_v25 = vrot.slane %v92_v19, 2  ;;  %p211_p5 = por %p210_p4, %p209_p3 }
  0x2e   :  { %v64_v23 = vrot.slane %v63_v17, 2  ;;  %v109_v26 = vrot.slane %v108_v20, 2  ;;  %v70_v27 = vrot.slane %v69_v21, 2  ;;  %v115_v28 = vrot.slane %v114_v22, 2  ;;  %v82_v42 = vld [vmem:[#allocation2 + $0x2] sm:$0x3] }
  0x2f   :  { %v88_v30 = vadd.f32 %v87_v24, %v86_v18  ;;  %v94_v31 = vadd.f32 %v93_v25, %v92_v19  ;;  %v59_v46 = vld [vmem:[#allocation2] sm:$0x3]  ;;  %v104_v48 = vld [vmem:[#allocation2 + $0x4] sm:$0x3]  ;;  %p212_p6 = pnand %p211_p5, %p205_p2 }
  0x30   :  { %v65_v29 = vadd.f32 %v64_v23, %v63_v17  ;;  %v110_v32 = vadd.f32 %v109_v26, %v108_v20  ;;  %v71_v33 = vadd.f32 %v70_v27, %v69_v21  ;;  %v116_v34 = vadd.f32 %v115_v28, %v114_v22 }
  0x31   :  { %v89_v36 = vrot.slane %v88_v30, 1  ;;  %v95_v37 = vrot.slane %v94_v31, 1 }
  0x32   :  { %v66_v35 = vrot.slane %v65_v29, 1  ;;  %v111_v38 = vrot.slane %v110_v32, 1  ;;  %v72_v39 = vrot.slane %v71_v33, 1  ;;  %v117_v40 = vrot.slane %v116_v34, 1 }
  0x33   :  { %v90_v43 = vadd.f32 %v89_v36, %v88_v30  ;;  %v96_v44 = vadd.f32 %v95_v37, %v94_v31 }
  0x34   :  { %v67_v41 = vadd.f32 %v66_v35, %v65_v29  ;;  %v112_v45 = vadd.f32 %v111_v38, %v110_v32  ;;  %v73_v47 = vadd.f32 %v72_v39, %v71_v33  ;;  %v118_v49 = vadd.f32 %v117_v40, %v116_v34 }
  0x35   :  { %v99_v50 = vsel %vm76_vm0, %v96_v44, %v90_v43 }
  0x36   :  { %v77_v51 = vsel %vm76_vm0, %v73_v47, %v67_v41  ;;  %v101_v52 = vadd.f32 %v99_v50, %v82_v42  ;;  %v121_v53 = vsel %vm76_vm0, %v118_v49, %v112_v45 }
  0x37   :  { %v79_v54 = vadd.f32 %v77_v51, %v59_v46  ;;  %v123_v55 = vadd.f32 %v121_v53, %v104_v48 }
  0x38   :  { %102 = vst [vmem:[#allocation2 + $0x2] sm:$0x3] %v101_v52 }
  0x39   :  { %80 = vst [vmem:[#allocation2] sm:$0x3] %v79_v54  ;;  %124 = vst [vmem:[#allocation2 + $0x4] sm:$0x3] %v123_v55 }
  0x40   :  { %v128_v56 = vld [vmem:[#allocation2] sm:$0xf]   ;;  %v130_v57 = vld [vmem:[#allocation2 + $0x4] sm:$0x3] }
  0x41   :  { %131 = vst [vmem:[#allocation8] sm:$0xf] %v128_v56   ;;  %133 = vst [vmem:[#allocation8 + $0x4] sm:$0x3] %v130_v57 }
  0x42   :  { %215 = shalt.err (!%p212_p6)
}
  0x43   :  { %s216_s10 = scalar_lea.hbm %s293_s2, 96 }
  0x44   :  { %p217_p7 = scmp.ne.s32.totalorder %s293_s2, %s216_s10  ;;  %p220_p8 = scmp.lt.u32.totalorder %s216_s10, %s293_s2 }
  0x46   :  { %p222_p9 = pnand %p220_p8, %p217_p7 }
  0x48   :  { %225 = shalt.err (!%p222_p9)
}
  0x49   :  { %s238_s15 = smov 32   ;;  %s239_s16 = smov 2  }
  0x4a   :  { %145 = dma.vmem_to_hbm [thread:$0]  %s140_s6, 96, %s293_s2, [#allocation5], %s238_s15, %s238_s15, %s239_s16  }
  0x4b   :  { %230 = dma.done.wait [#allocation5], 96  }
  0x4c   :  { %231 = vsyncadd [#allocation5], 4294967200 }
  0x4d   :  { %149 = vsyncpa [#allocation4], 1 }
  0x4e   :  { %150 = vsyncpa [#allocation7], 1 }
  0x4f   :  { %151 = vsyncpa [#allocation5], 1 }

</bundles_post_ra>
